<compile_context>
chip_gen: v5e
topology: v5e:2x2
jax: 0.10.0
libtpu: 0.0.40
codegen_flags: <defaults>
</compile_context>

<pallas_src>
import functools

import jax
import jax.numpy as jnp
from jax import lax
from jax.experimental import pallas as pl
from jax.experimental.pallas import tpu as pltpu

LANE = 128  # lane-dense width for the head output slab


def decoder_kernel(x_ref, h0_ref, c0_ref,
                   wih_ref, whh_ref, b_ref,
                   whead_ref, bhead_ref,
                   hn_ref, cn_ref, head_ref,
                   *, hidden_size, seq_len, batch):
    """LSTM recurrence + output heads, fully inside one kernel.

    x_ref     : (T*B, C+1)   time-major flattened (batch padded to 8 sublanes)
    h0/c0_ref : (B, H)
    wih_ref   : (C+1, 4H)    gate cols permuted to (i,f,o,g); i/f/o pre-scaled by 0.5
    whh_ref   : (H, 4H)      same permutation / pre-scale
    b_ref     : (1, 4H)      b_ih + b_hh, same permutation / pre-scale
    whead_ref : (H, 128)     [w_mu | w_sigma | zero-pad]
    bhead_ref : (1, 128)     [b_mu | b_sigma | zero-pad]
    head_ref  : (T*B, 128)   col 0 = mu, col 1 = softplus(sigma-logit)
    """
    H, T, B = hidden_size, seq_len, batch

    # ---- input projection for every timestep in one matmul (bias folded) ----
    xg = jnp.dot(x_ref[...], wih_ref[...],
                 preferred_element_type=jnp.float32) + b_ref[...]   # (T*B, 4H)

    whh = whh_ref[...]                                              # (H, 4H), hoisted
    h = h0_ref[...]                                                 # (B, H)
    c = c0_ref[...]                                                 # (B, H)

    # ---- fully unrolled serial recurrence: 1 MXU push + 2 EUP pushes / step ----
    hs = []
    for t in range(T):
        gates = xg[t * B:(t + 1) * B, :] + jnp.dot(
            h, whh, preferred_element_type=jnp.float32)             # (B, 4H)
        tg = jnp.tanh(gates)            # one tanh over the full 128-lane vreg
        sg = 0.5 * tg + 0.5             # sigmoid(x) == 0.5*tanh(x/2) + 0.5 (i|f|o)
        c = sg[:, H:2 * H] * c + sg[:, :H] * tg[:, 3 * H:]
        h = sg[:, 2 * H:3 * H] * jnp.tanh(c)
        hs.append(h)

    hn_ref[...] = h
    cn_ref[...] = c

    # ---- heads off the critical path: one (T*B, H) @ (H, 128) matmul ----
    hs_all = jnp.concatenate(hs, axis=0)                            # (T*B, H) live vregs
    heads = jnp.dot(hs_all, whead_ref[...],
                    preferred_element_type=jnp.float32) + bhead_ref[...]
    col = lax.broadcasted_iota(jnp.int32, heads.shape, 1)
    head_ref[...] = jnp.where(col == 1, jax.nn.softplus(heads), heads)


def decoder_forward(x, h0, c0, kp):
    """x: (T, B, C+1), h0/c0: (1, B, H), kp: packed kernel params."""
    T, B, C1 = x.shape
    H = kp["w_hh_t"].shape[0]
    Bp = max(8, ((B + 7) // 8) * 8)            # pad batch to full sublanes

    xp = jnp.pad(x, ((0, 0), (0, Bp - B), (0, 0))).reshape(T * Bp, C1)
    h0p = jnp.pad(h0[0], ((0, Bp - B), (0, 0)))
    c0p = jnp.pad(c0[0], ((0, Bp - B), (0, 0)))

    vmem = pl.BlockSpec(memory_space=pltpu.MemorySpace.VMEM)
    kernel = functools.partial(decoder_kernel, hidden_size=H, seq_len=T, batch=Bp)

    hn, cn, heads = pl.pallas_call(
        kernel,
        out_shape=(
            jax.ShapeDtypeStruct((Bp, H), jnp.float32),        # h_n
            jax.ShapeDtypeStruct((Bp, H), jnp.float32),        # c_n
            jax.ShapeDtypeStruct((T * Bp, LANE), jnp.float32),  # lane-dense head slab
        ),
        in_specs=[vmem] * 8,
        out_specs=(vmem, vmem, vmem),
    )(xp, h0p, c0p,
      kp["w_ih_t"], kp["w_hh_t"], kp["b"], kp["w_head"], kp["b_head"])

    heads = heads.reshape(T, Bp, LANE)
    mus = heads[:, :B, 0:1]
    sigmas = heads[:, :B, 1:2]
    return hn[None, :B], cn[None, :B], mus, sigmas


def init_torch_params(key, covariate_size, hidden_size):
    """Raw PyTorch-shaped params with U(-1/sqrt(H), 1/sqrt(H)) init."""
    H = hidden_size
    C1 = covariate_size + 1
    k = 1.0 / jnp.sqrt(jnp.float32(H))
    ks = jax.random.split(key, 8)
    u = lambda kk, shape: jax.random.uniform(kk, shape, jnp.float32, -k, k)
    return {
        "w_ih": u(ks[0], (4 * H, C1)),    # weight_ih_l0, gate order (i,f,g,o)
        "w_hh": u(ks[1], (4 * H, H)),     # weight_hh_l0
        "b_ih": u(ks[2], (4 * H,)),
        "b_hh": u(ks[3], (4 * H,)),
        "w_mu": u(ks[4], (1, H)),
        "b_mu": u(ks[5], (1,)),
        "w_sig": u(ks[6], (1, H)),
        "b_sig": u(ks[7], (1,)),
    }


def pack_params(p, hidden_size):
    """Transpose, permute gate cols (i,f,g,o)->(i,f,o,g), pre-scale i/f/o by 0.5,
    fuse biases, fuse + lane-pad the mu/sigma heads."""
    H = hidden_size

    def permute_prescale(w_t):                      # w_t: (*, 4H), PyTorch (i,f,g,o)
        ifo = jnp.concatenate([w_t[:, :2 * H], w_t[:, 3 * H:4 * H]], axis=1) * 0.5
        g = w_t[:, 2 * H:3 * H]
        return jnp.concatenate([ifo, g], axis=1)    # (i,f,o,g), i/f/o halved

    b = (p["b_ih"] + p["b_hh"]).reshape(1, 4 * H)
    w_head = jnp.concatenate([p["w_mu"].T, p["w_sig"].T], axis=1)       # (H, 2)
    w_head = jnp.pad(w_head, ((0, 0), (0, LANE - 2)))                   # (H, 128)
    b_head = jnp.concatenate([p["b_mu"], p["b_sig"]]).reshape(1, 2)
    b_head = jnp.pad(b_head, ((0, 0), (0, LANE - 2)))                   # (1, 128)
    return {
        "w_ih_t": permute_prescale(p["w_ih"].T),                        # (C+1, 4H)
        "w_hh_t": permute_prescale(p["w_hh"].T),                        # (H, 4H)
        "b": permute_prescale(b),                                       # (1, 4H)
        "w_head": w_head,
        "b_head": b_head,
    }


def decoder_reference(x, h0, c0, p):
    """Pure-JAX reference using raw PyTorch layout & (i,f,g,o) gate order."""
    H = p["w_hh"].shape[1]
    w_ih_t, w_hh_t = p["w_ih"].T, p["w_hh"].T
    b = (p["b_ih"] + p["b_hh"]).reshape(1, -1)

    def step(carry, x_t):
        h, c = carry
        g = x_t @ w_ih_t + h @ w_hh_t + b
        i_g = jax.nn.sigmoid(g[:, 0 * H:1 * H])
        f_g = jax.nn.sigmoid(g[:, 1 * H:2 * H])
        g_g = jnp.tanh(g[:, 2 * H:3 * H])
        o_g = jax.nn.sigmoid(g[:, 3 * H:4 * H])
        c = f_g * c + i_g * g_g
        h = o_g * jnp.tanh(c)
        return (h, c), h

    (h, c), outs = lax.scan(step, (h0[0], c0[0]), x)
    mus = outs @ p["w_mu"].T + p["b_mu"]
    sigmas = jax.nn.softplus(outs @ p["w_sig"].T + p["b_sig"])
    return h[None], c[None], mus, sigmas


if __name__ == "__main__":
    seq_len = 8
    covariate_size = 4
    hidden_size = 32
    batch = 2

    key = jax.random.PRNGKey(0)
    k_p, k_x, k_h, k_c = jax.random.split(key, 4)

    raw = init_torch_params(k_p, covariate_size, hidden_size)
    kp = pack_params(raw, hidden_size)

    x = jax.random.normal(k_x, (seq_len, batch, covariate_size + 1), jnp.float32)
    h0 = jax.random.normal(k_h, (1, batch, hidden_size), jnp.float32)
    c0 = jax.random.normal(k_c, (1, batch, hidden_size), jnp.float32)

    h_n, c_n, mus, sigmas = jax.block_until_ready(
        decoder_forward(x, h0, c0, kp))

    # sanity check against a pure-JAX reference in the original PyTorch layout
    h_r, c_r, mu_r, sig_r = decoder_reference(x, h0, c0, raw)
    assert jnp.allclose(h_n, h_r, atol=3e-5), "h_n mismatch"
    assert jnp.allclose(c_n, c_r, atol=3e-5), "c_n mismatch"
    assert jnp.allclose(mus, mu_r, atol=3e-5), "mus mismatch"
    assert jnp.allclose(sigmas, sig_r, atol=3e-5), "sigmas mismatch"

    print("KERNEL_OK")
</pallas_src>

<mosaic_0001>
module attributes {stable_mosaic.version = 11 : i64} {
  func.func @decoder_kernel(%arg0: memref<64x5xf32, #tpu.memory_space<vmem>>, %arg1: memref<8x32xf32, #tpu.memory_space<vmem>>, %arg2: memref<8x32xf32, #tpu.memory_space<vmem>>, %arg3: memref<5x128xf32, #tpu.memory_space<vmem>>, %arg4: memref<32x128xf32, #tpu.memory_space<vmem>>, %arg5: memref<1x128xf32, #tpu.memory_space<vmem>>, %arg6: memref<32x128xf32, #tpu.memory_space<vmem>>, %arg7: memref<1x128xf32, #tpu.memory_space<vmem>>, %arg8: memref<8x32xf32, #tpu.memory_space<vmem>>, %arg9: memref<8x32xf32, #tpu.memory_space<vmem>>, %arg10: memref<64x128xf32, #tpu.memory_space<vmem>>) attributes {dimension_semantics = [], scalar_prefetch = 0 : i64, scratch_operands = 0 : i64, tpu.core_type = #tpu.core_type<tc>} {
    %c0 = arith.constant 0 : index
    %c0_0 = arith.constant 0 : index
    %0 = vector.load %arg0[%c0, %c0_0] : memref<64x5xf32, #tpu.memory_space<vmem>>, vector<64x5xf32>
    %c0_1 = arith.constant 0 : index
    %c0_2 = arith.constant 0 : index
    %1 = vector.load %arg3[%c0_1, %c0_2] : memref<5x128xf32, #tpu.memory_space<vmem>>, vector<5x128xf32>
    %cst = arith.constant dense<0.000000e+00> : vector<64x128xf32>
    %2 = tpu.matmul %0, %1, %cst {dimension_numbers = #tpu.dot_dimension_numbers<[1], [0], [0], [1], [0, 0, 1, 1], [], []>} : vector<64x5xf32>, vector<5x128xf32>, vector<64x128xf32> -> vector<64x128xf32>
    %c0_3 = arith.constant 0 : index
    %c0_4 = arith.constant 0 : index
    %3 = vector.load %arg5[%c0_3, %c0_4] : memref<1x128xf32, #tpu.memory_space<vmem>>, vector<1x128xf32>
    %4 = vector.broadcast %3 : vector<1x128xf32> to vector<64x128xf32>
    %5 = arith.addf %2, %4 : vector<64x128xf32>
    %c0_5 = arith.constant 0 : index
    %c0_6 = arith.constant 0 : index
    %6 = vector.load %arg4[%c0_5, %c0_6] : memref<32x128xf32, #tpu.memory_space<vmem>>, vector<32x128xf32>
    %c0_7 = arith.constant 0 : index
    %c0_8 = arith.constant 0 : index
    %7 = vector.load %arg1[%c0_7, %c0_8] : memref<8x32xf32, #tpu.memory_space<vmem>>, vector<8x32xf32>
    %c0_9 = arith.constant 0 : index
    %c0_10 = arith.constant 0 : index
    %8 = vector.load %arg2[%c0_9, %c0_10] : memref<8x32xf32, #tpu.memory_space<vmem>>, vector<8x32xf32>
    %9 = vector.extract_strided_slice %5 {offsets = [0, 0], sizes = [8, 128], strides = [1, 1]} : vector<64x128xf32> to vector<8x128xf32>
    %cst_11 = arith.constant dense<0.000000e+00> : vector<8x128xf32>
    %10 = tpu.matmul %7, %6, %cst_11 {dimension_numbers = #tpu.dot_dimension_numbers<[1], [0], [0], [1], [0, 0, 1, 1], [], []>} : vector<8x32xf32>, vector<32x128xf32>, vector<8x128xf32> -> vector<8x128xf32>
    %11 = arith.addf %9, %10 : vector<8x128xf32>
    %12 = math.tanh %11 : vector<8x128xf32>
    %cst_12 = arith.constant 5.000000e-01 : f32
    %13 = vector.broadcast %cst_12 : f32 to vector<8x128xf32>
    %14 = arith.mulf %13, %12 : vector<8x128xf32>
    %cst_13 = arith.constant 5.000000e-01 : f32
    %15 = vector.broadcast %cst_13 : f32 to vector<8x128xf32>
    %16 = arith.addf %14, %15 : vector<8x128xf32>
    %17 = vector.extract_strided_slice %16 {offsets = [0, 32], sizes = [8, 32], strides = [1, 1]} : vector<8x128xf32> to vector<8x32xf32>
    %18 = arith.mulf %17, %8 : vector<8x32xf32>
    %19 = vector.extract_strided_slice %16 {offsets = [0, 0], sizes = [8, 32], strides = [1, 1]} : vector<8x128xf32> to vector<8x32xf32>
    %20 = vector.extract_strided_slice %12 {offsets = [0, 96], sizes = [8, 32], strides = [1, 1]} : vector<8x128xf32> to vector<8x32xf32>
    %21 = arith.mulf %19, %20 : vector<8x32xf32>
    %22 = arith.addf %18, %21 : vector<8x32xf32>
    %23 = vector.extract_strided_slice %16 {offsets = [0, 64], sizes = [8, 32], strides = [1, 1]} : vector<8x128xf32> to vector<8x32xf32>
    %24 = math.tanh %22 : vector<8x32xf32>
    %25 = arith.mulf %23, %24 : vector<8x32xf32>
    %26 = vector.extract_strided_slice %5 {offsets = [8, 0], sizes = [8, 128], strides = [1, 1]} : vector<64x128xf32> to vector<8x128xf32>
    %cst_14 = arith.constant dense<0.000000e+00> : vector<8x128xf32>
    %27 = tpu.matmul %25, %6, %cst_14 {dimension_numbers = #tpu.dot_dimension_numbers<[1], [0], [0], [1], [0, 0, 1, 1], [], []>} : vector<8x32xf32>, vector<32x128xf32>, vector<8x128xf32> -> vector<8x128xf32>
    %28 = arith.addf %26, %27 : vector<8x128xf32>
    %29 = math.tanh %28 : vector<8x128xf32>
    %cst_15 = arith.constant 5.000000e-01 : f32
    %30 = vector.broadcast %cst_15 : f32 to vector<8x128xf32>
    %31 = arith.mulf %30, %29 : vector<8x128xf32>
    %cst_16 = arith.constant 5.000000e-01 : f32
    %32 = vector.broadcast %cst_16 : f32 to vector<8x128xf32>
    %33 = arith.addf %31, %32 : vector<8x128xf32>
    %34 = vector.extract_strided_slice %33 {offsets = [0, 32], sizes = [8, 32], strides = [1, 1]} : vector<8x128xf32> to vector<8x32xf32>
    %35 = arith.mulf %34, %22 : vector<8x32xf32>
    %36 = vector.extract_strided_slice %33 {offsets = [0, 0], sizes = [8, 32], strides = [1, 1]} : vector<8x128xf32> to vector<8x32xf32>
    %37 = vector.extract_strided_slice %29 {offsets = [0, 96], sizes = [8, 32], strides = [1, 1]} : vector<8x128xf32> to vector<8x32xf32>
    %38 = arith.mulf %36, %37 : vector<8x32xf32>
    %39 = arith.addf %35, %38 : vector<8x32xf32>
    %40 = vector.extract_strided_slice %33 {offsets = [0, 64], sizes = [8, 32], strides = [1, 1]} : vector<8x128xf32> to vector<8x32xf32>
    %41 = math.tanh %39 : vector<8x32xf32>
    %42 = arith.mulf %40, %41 : vector<8x32xf32>
    %43 = vector.extract_strided_slice %5 {offsets = [16, 0], sizes = [8, 128], strides = [1, 1]} : vector<64x128xf32> to vector<8x128xf32>
    %cst_17 = arith.constant dense<0.000000e+00> : vector<8x128xf32>
    %44 = tpu.matmul %42, %6, %cst_17 {dimension_numbers = #tpu.dot_dimension_numbers<[1], [0], [0], [1], [0, 0, 1, 1], [], []>} : vector<8x32xf32>, vector<32x128xf32>, vector<8x128xf32> -> vector<8x128xf32>
    %45 = arith.addf %43, %44 : vector<8x128xf32>
    %46 = math.tanh %45 : vector<8x128xf32>
    %cst_18 = arith.constant 5.000000e-01 : f32
    %47 = vector.broadcast %cst_18 : f32 to vector<8x128xf32>
    %48 = arith.mulf %47, %46 : vector<8x128xf32>
    %cst_19 = arith.constant 5.000000e-01 : f32
    %49 = vector.broadcast %cst_19 : f32 to vector<8x128xf32>
    %50 = arith.addf %48, %49 : vector<8x128xf32>
    %51 = vector.extract_strided_slice %50 {offsets = [0, 32], sizes = [8, 32], strides = [1, 1]} : vector<8x128xf32> to vector<8x32xf32>
    %52 = arith.mulf %51, %39 : vector<8x32xf32>
    %53 = vector.extract_strided_slice %50 {offsets = [0, 0], sizes = [8, 32], strides = [1, 1]} : vector<8x128xf32> to vector<8x32xf32>
    %54 = vector.extract_strided_slice %46 {offsets = [0, 96], sizes = [8, 32], strides = [1, 1]} : vector<8x128xf32> to vector<8x32xf32>
    %55 = arith.mulf %53, %54 : vector<8x32xf32>
    %56 = arith.addf %52, %55 : vector<8x32xf32>
    %57 = vector.extract_strided_slice %50 {offsets = [0, 64], sizes = [8, 32], strides = [1, 1]} : vector<8x128xf32> to vector<8x32xf32>
    %58 = math.tanh %56 : vector<8x32xf32>
    %59 = arith.mulf %57, %58 : vector<8x32xf32>
    %60 = vector.extract_strided_slice %5 {offsets = [24, 0], sizes = [8, 128], strides = [1, 1]} : vector<64x128xf32> to vector<8x128xf32>
    %cst_20 = arith.constant dense<0.000000e+00> : vector<8x128xf32>
    %61 = tpu.matmul %59, %6, %cst_20 {dimension_numbers = #tpu.dot_dimension_numbers<[1], [0], [0], [1], [0, 0, 1, 1], [], []>} : vector<8x32xf32>, vector<32x128xf32>, vector<8x128xf32> -> vector<8x128xf32>
    %62 = arith.addf %60, %61 : vector<8x128xf32>
    %63 = math.tanh %62 : vector<8x128xf32>
    %cst_21 = arith.constant 5.000000e-01 : f32
    %64 = vector.broadcast %cst_21 : f32 to vector<8x128xf32>
    %65 = arith.mulf %64, %63 : vector<8x128xf32>
    %cst_22 = arith.constant 5.000000e-01 : f32
    %66 = vector.broadcast %cst_22 : f32 to vector<8x128xf32>
    %67 = arith.addf %65, %66 : vector<8x128xf32>
    %68 = vector.extract_strided_slice %67 {offsets = [0, 32], sizes = [8, 32], strides = [1, 1]} : vector<8x128xf32> to vector<8x32xf32>
    %69 = arith.mulf %68, %56 : vector<8x32xf32>
    %70 = vector.extract_strided_slice %67 {offsets = [0, 0], sizes = [8, 32], strides = [1, 1]} : vector<8x128xf32> to vector<8x32xf32>
    %71 = vector.extract_strided_slice %63 {offsets = [0, 96], sizes = [8, 32], strides = [1, 1]} : vector<8x128xf32> to vector<8x32xf32>
    %72 = arith.mulf %70, %71 : vector<8x32xf32>
    %73 = arith.addf %69, %72 : vector<8x32xf32>
    %74 = vector.extract_strided_slice %67 {offsets = [0, 64], sizes = [8, 32], strides = [1, 1]} : vector<8x128xf32> to vector<8x32xf32>
    %75 = math.tanh %73 : vector<8x32xf32>
    %76 = arith.mulf %74, %75 : vector<8x32xf32>
    %77 = vector.extract_strided_slice %5 {offsets = [32, 0], sizes = [8, 128], strides = [1, 1]} : vector<64x128xf32> to vector<8x128xf32>
    %cst_23 = arith.constant dense<0.000000e+00> : vector<8x128xf32>
    %78 = tpu.matmul %76, %6, %cst_23 {dimension_numbers = #tpu.dot_dimension_numbers<[1], [0], [0], [1], [0, 0, 1, 1], [], []>} : vector<8x32xf32>, vector<32x128xf32>, vector<8x128xf32> -> vector<8x128xf32>
    %79 = arith.addf %77, %78 : vector<8x128xf32>
    %80 = math.tanh %79 : vector<8x128xf32>
    %cst_24 = arith.constant 5.000000e-01 : f32
    %81 = vector.broadcast %cst_24 : f32 to vector<8x128xf32>
    %82 = arith.mulf %81, %80 : vector<8x128xf32>
    %cst_25 = arith.constant 5.000000e-01 : f32
    %83 = vector.broadcast %cst_25 : f32 to vector<8x128xf32>
    %84 = arith.addf %82, %83 : vector<8x128xf32>
    %85 = vector.extract_strided_slice %84 {offsets = [0, 32], sizes = [8, 32], strides = [1, 1]} : vector<8x128xf32> to vector<8x32xf32>
    %86 = arith.mulf %85, %73 : vector<8x32xf32>
    %87 = vector.extract_strided_slice %84 {offsets = [0, 0], sizes = [8, 32], strides = [1, 1]} : vector<8x128xf32> to vector<8x32xf32>
    %88 = vector.extract_strided_slice %80 {offsets = [0, 96], sizes = [8, 32], strides = [1, 1]} : vector<8x128xf32> to vector<8x32xf32>
    %89 = arith.mulf %87, %88 : vector<8x32xf32>
    %90 = arith.addf %86, %89 : vector<8x32xf32>
    %91 = vector.extract_strided_slice %84 {offsets = [0, 64], sizes = [8, 32], strides = [1, 1]} : vector<8x128xf32> to vector<8x32xf32>
    %92 = math.tanh %90 : vector<8x32xf32>
    %93 = arith.mulf %91, %92 : vector<8x32xf32>
    %94 = vector.extract_strided_slice %5 {offsets = [40, 0], sizes = [8, 128], strides = [1, 1]} : vector<64x128xf32> to vector<8x128xf32>
    %cst_26 = arith.constant dense<0.000000e+00> : vector<8x128xf32>
    %95 = tpu.matmul %93, %6, %cst_26 {dimension_numbers = #tpu.dot_dimension_numbers<[1], [0], [0], [1], [0, 0, 1, 1], [], []>} : vector<8x32xf32>, vector<32x128xf32>, vector<8x128xf32> -> vector<8x128xf32>
    %96 = arith.addf %94, %95 : vector<8x128xf32>
    %97 = math.tanh %96 : vector<8x128xf32>
    %cst_27 = arith.constant 5.000000e-01 : f32
    %98 = vector.broadcast %cst_27 : f32 to vector<8x128xf32>
    %99 = arith.mulf %98, %97 : vector<8x128xf32>
    %cst_28 = arith.constant 5.000000e-01 : f32
    %100 = vector.broadcast %cst_28 : f32 to vector<8x128xf32>
    %101 = arith.addf %99, %100 : vector<8x128xf32>
    %102 = vector.extract_strided_slice %101 {offsets = [0, 32], sizes = [8, 32], strides = [1, 1]} : vector<8x128xf32> to vector<8x32xf32>
    %103 = arith.mulf %102, %90 : vector<8x32xf32>
    %104 = vector.extract_strided_slice %101 {offsets = [0, 0], sizes = [8, 32], strides = [1, 1]} : vector<8x128xf32> to vector<8x32xf32>
    %105 = vector.extract_strided_slice %97 {offsets = [0, 96], sizes = [8, 32], strides = [1, 1]} : vector<8x128xf32> to vector<8x32xf32>
    %106 = arith.mulf %104, %105 : vector<8x32xf32>
    %107 = arith.addf %103, %106 : vector<8x32xf32>
    %108 = vector.extract_strided_slice %101 {offsets = [0, 64], sizes = [8, 32], strides = [1, 1]} : vector<8x128xf32> to vector<8x32xf32>
    %109 = math.tanh %107 : vector<8x32xf32>
    %110 = arith.mulf %108, %109 : vector<8x32xf32>
    %111 = vector.extract_strided_slice %5 {offsets = [48, 0], sizes = [8, 128], strides = [1, 1]} : vector<64x128xf32> to vector<8x128xf32>
    %cst_29 = arith.constant dense<0.000000e+00> : vector<8x128xf32>
    %112 = tpu.matmul %110, %6, %cst_29 {dimension_numbers = #tpu.dot_dimension_numbers<[1], [0], [0], [1], [0, 0, 1, 1], [], []>} : vector<8x32xf32>, vector<32x128xf32>, vector<8x128xf32> -> vector<8x128xf32>
    %113 = arith.addf %111, %112 : vector<8x128xf32>
    %114 = math.tanh %113 : vector<8x128xf32>
    %cst_30 = arith.constant 5.000000e-01 : f32
    %115 = vector.broadcast %cst_30 : f32 to vector<8x128xf32>
    %116 = arith.mulf %115, %114 : vector<8x128xf32>
    %cst_31 = arith.constant 5.000000e-01 : f32
    %117 = vector.broadcast %cst_31 : f32 to vector<8x128xf32>
    %118 = arith.addf %116, %117 : vector<8x128xf32>
    %119 = vector.extract_strided_slice %118 {offsets = [0, 32], sizes = [8, 32], strides = [1, 1]} : vector<8x128xf32> to vector<8x32xf32>
    %120 = arith.mulf %119, %107 : vector<8x32xf32>
    %121 = vector.extract_strided_slice %118 {offsets = [0, 0], sizes = [8, 32], strides = [1, 1]} : vector<8x128xf32> to vector<8x32xf32>
    %122 = vector.extract_strided_slice %114 {offsets = [0, 96], sizes = [8, 32], strides = [1, 1]} : vector<8x128xf32> to vector<8x32xf32>
    %123 = arith.mulf %121, %122 : vector<8x32xf32>
    %124 = arith.addf %120, %123 : vector<8x32xf32>
    %125 = vector.extract_strided_slice %118 {offsets = [0, 64], sizes = [8, 32], strides = [1, 1]} : vector<8x128xf32> to vector<8x32xf32>
    %126 = math.tanh %124 : vector<8x32xf32>
    %127 = arith.mulf %125, %126 : vector<8x32xf32>
    %128 = vector.extract_strided_slice %5 {offsets = [56, 0], sizes = [8, 128], strides = [1, 1]} : vector<64x128xf32> to vector<8x128xf32>
    %cst_32 = arith.constant dense<0.000000e+00> : vector<8x128xf32>
    %129 = tpu.matmul %127, %6, %cst_32 {dimension_numbers = #tpu.dot_dimension_numbers<[1], [0], [0], [1], [0, 0, 1, 1], [], []>} : vector<8x32xf32>, vector<32x128xf32>, vector<8x128xf32> -> vector<8x128xf32>
    %130 = arith.addf %128, %129 : vector<8x128xf32>
    %131 = math.tanh %130 : vector<8x128xf32>
    %cst_33 = arith.constant 5.000000e-01 : f32
    %132 = vector.broadcast %cst_33 : f32 to vector<8x128xf32>
    %133 = arith.mulf %132, %131 : vector<8x128xf32>
    %cst_34 = arith.constant 5.000000e-01 : f32
    %134 = vector.broadcast %cst_34 : f32 to vector<8x128xf32>
    %135 = arith.addf %133, %134 : vector<8x128xf32>
    %136 = vector.extract_strided_slice %135 {offsets = [0, 32], sizes = [8, 32], strides = [1, 1]} : vector<8x128xf32> to vector<8x32xf32>
    %137 = arith.mulf %136, %124 : vector<8x32xf32>
    %138 = vector.extract_strided_slice %135 {offsets = [0, 0], sizes = [8, 32], strides = [1, 1]} : vector<8x128xf32> to vector<8x32xf32>
    %139 = vector.extract_strided_slice %131 {offsets = [0, 96], sizes = [8, 32], strides = [1, 1]} : vector<8x128xf32> to vector<8x32xf32>
    %140 = arith.mulf %138, %139 : vector<8x32xf32>
    %141 = arith.addf %137, %140 : vector<8x32xf32>
    %142 = vector.extract_strided_slice %135 {offsets = [0, 64], sizes = [8, 32], strides = [1, 1]} : vector<8x128xf32> to vector<8x32xf32>
    %143 = math.tanh %141 : vector<8x32xf32>
    %144 = arith.mulf %142, %143 : vector<8x32xf32>
    %c0_35 = arith.constant 0 : index
    %c0_36 = arith.constant 0 : index
    %145 = vector.load %arg8[%c0_35, %c0_36] : memref<8x32xf32, #tpu.memory_space<vmem>>, vector<8x32xf32>
    tpu.vector_store %arg8[%c0_35, %c0_36], %144 {strides = array<i32>} : memref<8x32xf32, #tpu.memory_space<vmem>>, vector<8x32xf32>,
    %c0_37 = arith.constant 0 : index
    %c0_38 = arith.constant 0 : index
    %146 = vector.load %arg9[%c0_37, %c0_38] : memref<8x32xf32, #tpu.memory_space<vmem>>, vector<8x32xf32>
    tpu.vector_store %arg9[%c0_37, %c0_38], %141 {strides = array<i32>} : memref<8x32xf32, #tpu.memory_space<vmem>>, vector<8x32xf32>,
    %147 = tpu.concatenate %25, %42, %59, %76, %93, %110, %127, %144 in 0 : vector<8x32xf32>, vector<8x32xf32>, vector<8x32xf32>, vector<8x32xf32>, vector<8x32xf32>, vector<8x32xf32>, vector<8x32xf32>, vector<8x32xf32> -> vector<64x32xf32>
    %c0_39 = arith.constant 0 : index
    %c0_40 = arith.constant 0 : index
    %148 = vector.load %arg6[%c0_39, %c0_40] : memref<32x128xf32, #tpu.memory_space<vmem>>, vector<32x128xf32>
    %cst_41 = arith.constant dense<0.000000e+00> : vector<64x128xf32>
    %149 = tpu.matmul %147, %148, %cst_41 {dimension_numbers = #tpu.dot_dimension_numbers<[1], [0], [0], [1], [0, 0, 1, 1], [], []>} : vector<64x32xf32>, vector<32x128xf32>, vector<64x128xf32> -> vector<64x128xf32>
    %c0_42 = arith.constant 0 : index
    %c0_43 = arith.constant 0 : index
    %150 = vector.load %arg7[%c0_42, %c0_43] : memref<1x128xf32, #tpu.memory_space<vmem>>, vector<1x128xf32>
    %151 = vector.broadcast %150 : vector<1x128xf32> to vector<64x128xf32>
    %152 = arith.addf %149, %151 : vector<64x128xf32>
    %153 = tpu.iota {dimensions = array<i32: 1>} : vector<64x128xi32>
    %c1_i32 = arith.constant 1 : i32
    %154 = vector.broadcast %c1_i32 : i32 to vector<64x128xi32>
    %155 = arith.cmpi eq, %153, %154 : vector<64x128xi32>
    %cst_44 = arith.constant 0.000000e+00 : f32
    %156 = vector.broadcast %cst_44 : f32 to vector<64x128xf32>
    %157 = arith.maximumf %152, %156 : vector<64x128xf32>
    %158 = vector.broadcast %cst_44 : f32 to vector<64x128xf32>
    %159 = arith.subf %152, %158 : vector<64x128xf32>
    %160 = arith.cmpf one, %159, %159 : vector<64x128xf32>
    %161 = vector.broadcast %cst_44 : f32 to vector<64x128xf32>
    %162 = arith.addf %152, %161 : vector<64x128xf32>
    %163 = math.absf %159 : vector<64x128xf32>
    %cst_45 = arith.constant 0.000000e+00 : f32
    %164 = vector.broadcast %cst_45 : f32 to vector<64x128xf32>
    %165 = arith.subf %164, %163 : vector<64x128xf32>
    %166 = math.exp %165 : vector<64x128xf32>
    %167 = math.log1p %166 : vector<64x128xf32>
    %168 = arith.addf %157, %167 : vector<64x128xf32>
    %169 = arith.select %160, %162, %168 : vector<64x128xi1>, vector<64x128xf32>
    %170 = arith.select %155, %169, %152 : vector<64x128xi1>, vector<64x128xf32>
    %c0_46 = arith.constant 0 : index
    %c0_47 = arith.constant 0 : index
    %171 = vector.load %arg10[%c0_46, %c0_47] : memref<64x128xf32, #tpu.memory_space<vmem>>, vector<64x128xf32>
    tpu.vector_store %arg10[%c0_46, %c0_47], %170 {strides = array<i32>} : memref<64x128xf32, #tpu.memory_space<vmem>>, vector<64x128xf32>,
    return
  }
}

</mosaic_0001>

<bundles_post_ra>
// kernel: tpu_custom_call.1
= control target key start
LH: loop header
LB: loop body
LE: loop exit
PB: predicated region body
PF: predicated region fallthrough
CT: control target
= control target key end

     0   :  { %16 = vsyncpa [#allocation3], 0  ;;  %s1359_s0 = inlined_call_operand.vmem [shape: f32[64,5], index: 0, kind: input, shape index: {}]   ;;  %s1360_s1 = inlined_call_operand.vmem [shape: f32[8,32], index: 1, kind: input, shape index: {}]   ;;  %s1361_s2 = inlined_call_operand.hbm [shape: f32[8,32], index: 2, kind: input, shape index: {}]   ;;  %s1362_s3 = inlined_call_operand.hbm [shape: f32[5,128], index: 3, kind: input, shape index: {}]   ;;  %s1363_s4 = inlined_call_operand.vmem [shape: f32[32,128], index: 4, kind: input, shape index: {}]   ;;  %s1364_s5 = inlined_call_operand.vmem [shape: f32[1,128], index: 5, kind: input, shape index: {}]   ;;  %s1365_s6 = inlined_call_operand.vmem [shape: f32[32,128], index: 6, kind: input, shape index: {}]   ;;  %s1366_s7 = inlined_call_operand.vmem [shape: f32[1,128], index: 7, kind: input, shape index: {}]   ;;  %s1367_s8 = inlined_call_operand.hbm [shape: f32[8,32], index: 8, kind: output, shape index: {0}]   ;;  %s1368_s9 = inlined_call_operand.hbm [shape: f32[8,32], index: 9, kind: output, shape index: {1}]   ;;  %s1369_s10 = inlined_call_operand.hbm [shape: f32[64,128], index: 10, kind: output, shape index: {2}]  }
   0x1   :  { %17 = vsyncpa [#allocation6], 0 }
   0x2   :  { %18 = vsyncpa [#allocation4], 0 }
   0x3   :  { %19 = vsyncpa [#allocation9], 0  ;;  %s29_s15 = sshll.u32 %s1361_s2, 4  ;;  %s1031_s16 = smov [#allocation2]   ;;  %s30_s15 = int_to_ptr.hbm [resolvable:$true] %s29_s15 }
   0x4   :  { %s31_s17 = sshll.u32 %s1031_s16, 4  ;;  %s40_s20 = sshll.u32 %s1362_s3, 4  ;;  %s32_s17 = int_to_ptr.vmem [resolvable:$true] %s31_s17  ;;  %s41_s20 = int_to_ptr.hbm [resolvable:$true] %s40_s20 }
   0x5   :  { %34 = dma.hbm_to_vmem [thread:$0]  %s30_s15, 128, %s32_s17, [#allocation3]  }
   0x6   :  { %s1032_s21 = smov [#allocation5]  }
   0x7   :  { %s42_s22 = sshll.u32 %s1032_s21, 4  ;;  %s43_s22 = int_to_ptr.vmem [resolvable:$true] %s42_s22 }
   0x8   :  { %45 = dma.hbm_to_vmem [thread:$0]  %s41_s20, 128, %s43_s22, [#allocation6]  }
   0x9   :  { %1023 = dma.done.wait [#allocation3], 128  }
   0xa   :  { %1024 = vsyncadd [#allocation3], 4294967168 }
   0xb   :  { %1025 = dma.done.wait [#allocation6], 128  }
   0xc   :  { %1026 = vsyncadd [#allocation6], 4294967168  ;;  %vm100_vm0 = vcmask 1044480   ;;  %vm75_vm1 = vcmask 39936   ;;  %v70_v0 = vld [vmem:[#allocation5] sm:$0x1f] }
   0xd   :  { %v69_v1 = vld [vmem:[%s1359_s0 + $0x38] sm:$0xff]  ;;  %822 = vmatpush.msk.msra.mxu2 %vm100_vm0, %v70_v0  ;;  %797 = vmatpush.msk.msra.mxu0 %vm100_vm0, %v70_v0  ;;  %v1114_v3 = vld [vmem:[%s1363_s4 + $0x10] sm:$0xff]  ;;  %v62_v4 = vld [vmem:[%s1359_s0] sm:$0xff]  ;;  %vm151_vm2 = vcmask 261120   ;;  %s1033_s15 = smov 32   ;;  %s1036_s14 = smov [#allocation8]  }
   0xe   :  { %v1108_v2 = vld [vmem:[%s1363_s4 + $0x18] sm:$0xff]  ;;  %805 = vmatmul.msk.f32.vlgmr.msra.gmra.mxu2 %vm75_vm1, %v69_v1  ;;  %798 = vmatmul.msk.f32.vlgmr.msra.gmra.mxu0 %vm75_vm1, %v62_v4  ;;  %v1125_v5 = vld [vmem:[%s1363_s4 + $0x8] sm:$0xff]  ;;  %v145_v6 = vld [vmem:[%s1363_s4] sm:$0xff]  ;;  %s764_s17 = sshll.u32 %s1368_s9, 4  ;;  %s753_s19 = sshll.u32 %s1367_s8, 4  ;;  %s765_s17 = int_to_ptr.hbm [resolvable:$true] %s764_s17  ;;  %s754_s19 = int_to_ptr.hbm [resolvable:$true] %s753_s19 }
   0xf   :  { %263 = vmatpush.msra.mxu3 %v1108_v2  ;;  %167 = vmatpush.msrb.mxu2 %v1108_v2  ;;  %v149_v7 = vld [vmem:[%s1360_s1] sm:$0xff]  ;;  %v63_v27 = vld [vmem:[%s1359_s0 + $0x8] sm:$0xff]  ;;  %v64_v44 = vld [vmem:[%s1359_s0 + $0x10] sm:$0xff]  ;;  %s762_s1 = sshll.u32 %s1036_s14, 4  ;;  %s1037_s20 = smov [#allocation7]   ;;  %s763_s1 = int_to_ptr.vmem [resolvable:$true] %s762_s1 }
  0x10   :  { %309 = vmatpush.msra.mxu1 %v1108_v2  ;;  %v1158_v10 = vld [vmem:[%s1364_s5] ss:$0 sm:$0xff]  ;;  %s1034_s5 = smov 64   ;;  %v65_v59 = vld [vmem:[%s1359_s0 + $0x18] sm:$0xff]  ;;  %s1038_s8 = smov [#allocation10]  }
  0x11   :  { %264 = vmatpush.msra.mxu3 %v1114_v3  ;;  %168 = vmatpush.msrb.mxu2 %v1114_v3  ;;  %v150_v15 = vld [vmem:[#allocation2] sm:$0xff]  ;;  %s772_s9 = sshll.u32 %s1038_s8, 4  ;;  %s774_s2 = sshll.u32 %s1369_s10, 4  ;;  %s773_s9 = int_to_ptr.vmem [resolvable:$true] %s772_s9  ;;  %s775_s2 = int_to_ptr.hbm [resolvable:$true] %s774_s2 }
  0x12   :  { %310 = vmatpush.msra.mxu1 %v1114_v3  ;;  %s1039_s23 = smov 128   ;;  %s1040_s24 = smov 8  }
  0x13   :  { %265 = vmatpush.msra.mxu3 %v1125_v5  ;;  %169 = vmatpush.msrb.mxu2 %v1125_v5 }
  0x14   :  { %311 = vmatpush.msra.mxu1 %v1125_v5 }
  0x15   :  { %266 = vmatpush.msra.mxu3 %v145_v6  ;;  %170 = vmatpush.msrb.mxu2 %v145_v6 }
  0x16   :  { %806 = vmatmul.msk.f32.vlgmr.msrb.gmra.mxu2 %vm151_vm2, %v149_v7  ;;  %312 = vmatpush.msra.mxu1 %v145_v6 }
  0x17   :  { %401 = vmatpush.msrb.mxu3 %v1108_v2  ;;  %217 = vmatpush.msra.mxu2 %v1108_v2 }
  0x18   :  { %447 = vmatpush.msrb.mxu1 %v1108_v2  ;;  %799 = vmatmul.msk.f32.gmra.mxu0 %vm75_vm1, %v63_v27 }
  0x19   :  { %402 = vmatpush.msrb.mxu3 %v1114_v3  ;;  %218 = vmatpush.msra.mxu2 %v1114_v3 }
  0x1a   :  { %448 = vmatpush.msrb.mxu1 %v1114_v3 }
  0x1b   :  { %403 = vmatpush.msrb.mxu3 %v1125_v5  ;;  %219 = vmatpush.msra.mxu2 %v1125_v5 }
  0x1c   :  { %449 = vmatpush.msrb.mxu1 %v1125_v5 }
  0x1d   :  { %404 = vmatpush.msrb.mxu3 %v145_v6  ;;  %220 = vmatpush.msra.mxu2 %v145_v6 }
  0x1e   :  { %450 = vmatpush.msrb.mxu1 %v145_v6 }
  0x1f   :  { %355 = vmatpush.msrb.mxu2 %v1108_v2 }
  0x20   :  { %800 = vmatmul.msk.f32.gmra.mxu0 %vm75_vm1, %v64_v44  ;;  %v1246_v44 = vld [vmem:[%s1366_s7] ss:$0 sm:$0xff] }
  0x21   :  { %356 = vmatpush.msrb.mxu2 %v1114_v3 }
  0x23   :  { %357 = vmatpush.msrb.mxu2 %v1125_v5 }
  0x25   :  { %358 = vmatpush.msrb.mxu2 %v145_v6 }
  0x28   :  { %801 = vmatmul.msk.f32.gmra.mxu0 %vm75_vm1, %v65_v59 }
  0x8b   :  { %v121_v9 = vpop.f32.mrf.mxu0 }
  0x8c   :  { %v122_v11 = vadd.f32 %v1158_v10, %v121_v9 }
  0x91   :  { %v1153_v8 = vpop.f32.mrf.mxu2 }
  0x95   :  { %v124_v29 = vpop.f32.mrf.mxu0 }
  0x96   :  { %v125_v30 = vadd.f32 %v1158_v10, %v124_v29 }
  0x99   :  { %v172_v12 = vpop.f32.mrf.mxu2 }
  0x9a   :  { %v175_v13 = vadd.f32 %v172_v12, %v122_v11 }
  0x9c   :  { %839 = vtanh.f32 %v175_v13 }
  0x9d   :  { %v127_v46 = vpop.f32.mrf.mxu0 }
  0x9e   :  { %v128_v47 = vadd.f32 %v1158_v10, %v127_v46 }
  0xa2   :  { %v840_v14 = vpop.eup %839 }
  0xa3   :  { %185 = vrot.lane.b32.xlu0 %v840_v14, %s1033_s15  ;;  %v177_v16 = vmul.f32 0.5, %v840_v14 }
  0xa5   :  { %v178_v17 = vadd.f32 0.5, %v177_v16  ;;  %v130_v63 = vpop.f32.mrf.mxu0  ;;  %v66_v16 = vld [vmem:[%s1359_s0 + $0x20] sm:$0xff] }
  0xa6   :  { %v131_v0 = vadd.f32 %v1158_v10, %v130_v63  ;;  %802 = vmatmul.msk.f32.gmra.mxu0 %vm75_vm1, %v66_v16 }
  0xab   :  { %180 = vrot.lane.b32.xlu0 %v150_v15, %s1033_s15 }
 0x115   :  { %v186_v18 = vpop.permute.xlu0 %185 }
 0x116   :  { %v188_v19 = vmul.f32 %v186_v18, %v178_v17 }
 0x118   :  { %190 = vrot.lane.b32.xlu1 %v188_v19, %s1033_s15 }
 0x11d   :  { %v181_v20 = vpop.permute.xlu0 %180 }
 0x11e   :  { %v183_v21 = vmul.f32 %v181_v20, %v178_v17 }
 0x123   :  { %v133_v18 = vpop.f32.mrf.mxu0 }
 0x124   :  { %v134_v19 = vadd.f32 %v1158_v10, %v133_v18 }
 0x18a   :  { %v191_v22 = vpop.permute.xlu1 %190 }
 0x18b   :  { %v193_v23 = vadd.f32 %v191_v22, %v183_v21 }
 0x18d   :  { %841 = vtanh.f32 %v193_v23 }
 0x193   :  { %v842_v24 = vpop.eup %841 }
 0x194   :  { %196 = vrot.lane.b32.xlu1 %v842_v24, %s1033_s15 }
 0x206   :  { %v197_v25 = vpop.permute.xlu1 %196 }
 0x207   :  { %v199_v26 = vmul.f32 %v197_v25, %v178_v17 }
 0x209   :  { %201 = vrot.lane.b32.xlu2 %v199_v26, %s1034_s5 }
 0x263   :  { %v1170_v28 = vpop.permute.xlu2 %201 }
 0x264   :  { %807 = vmatmul.msk.f32.vlgmr.msra.gmra.mxu2 %vm151_vm2, %v1170_v28 }
 0x265   :  { %493 = vmatpush.msra.mxu2 %v1108_v2 }
 0x267   :  { %494 = vmatpush.msra.mxu2 %v1114_v3 }
 0x269   :  { %495 = vmatpush.msra.mxu2 %v1125_v5 }
 0x26b   :  { %496 = vmatpush.msra.mxu2 %v145_v6 }
 0x2e7   :  { %v222_v31 = vpop.f32.mrf.mxu2 }
 0x2e8   :  { %v225_v32 = vadd.f32 %v222_v31, %v125_v30 }
 0x2ea   :  { %843 = vtanh.f32 %v225_v32 }
 0x2f0   :  { %v844_v33 = vpop.eup %843 }
 0x2f1   :  { %231 = vrot.lane.b32.xlu2 %v844_v33, %s1033_s15  ;;  %v227_v34 = vmul.f32 0.5, %v844_v33 }
 0x2f3   :  { %v228_v35 = vadd.f32 0.5, %v227_v34  ;;  %v535_v34 = vld [vmem:[%s1365_s6 + $0x18] sm:$0xff] }
 0x2f5   :  { %v229_v38 = vmul.f32 %v228_v35, %v193_v23 }
 0x34b   :  { %v232_v36 = vpop.permute.xlu2 %231 }
 0x34c   :  { %v234_v37 = vmul.f32 %v232_v36, %v228_v35  ;;  %v67_v36 = vld [vmem:[%s1359_s0 + $0x28] sm:$0xff] }
 0x34d   :  { %803 = vmatmul.msk.f32.gmra.mxu0 %vm75_vm1, %v67_v36 }
 0x34e   :  { %236 = vrot.lane.b32.xlu0 %v234_v37, %s1033_s15  ;;  %v533_v37 = vld [vmem:[%s1365_s6 + $0x8] sm:$0xff] }
 0x3c0   :  { %v237_v39 = vpop.permute.xlu0 %236 }
 0x3c1   :  { %v239_v40 = vadd.f32 %v237_v39, %v229_v38  ;;  %v532_v38 = vld [vmem:[%s1365_s6] sm:$0xff] }
 0x3c3   :  { %845 = vtanh.f32 %v239_v40 }
 0x3c9   :  { %v846_v41 = vpop.eup %845 }
 0x3ca   :  { %242 = vrot.lane.b32.xlu1 %v846_v41, %s1033_s15 }
 0x43c   :  { %v243_v42 = vpop.permute.xlu1 %242 }
 0x43d   :  { %v245_v43 = vmul.f32 %v243_v42, %v228_v35  ;;  %v534_v35 = vld [vmem:[%s1365_s6 + $0x10] sm:$0xff] }
 0x43f   :  { %247 = vrot.lane.b32.xlu2 %v245_v43, %s1034_s5 }
 0x499   :  { %v1186_v45 = vpop.permute.xlu2 %247 }
 0x49a   :  { %808 = vmatmul.msk.f32.vlgmr.msra.gmra.mxu3 %vm151_vm2, %v1186_v45 }
 0x49b   :  { %823 = vmatpush.msra.mxu3 %v535_v34 }
 0x49d   :  { %824 = vmatpush.msra.mxu3 %v534_v35 }
 0x49f   :  { %825 = vmatpush.msra.mxu3 %v533_v37 }
 0x4a1   :  { %826 = vmatpush.msra.mxu3 %v532_v38 }
 0x51d   :  { %v268_v48 = vpop.f32.mrf.mxu3 }
 0x51e   :  { %v271_v49 = vadd.f32 %v268_v48, %v128_v47 }
 0x520   :  { %847 = vtanh.f32 %v271_v49 }
 0x526   :  { %v848_v50 = vpop.eup %847 }
 0x527   :  { %277 = vrot.lane.b32.xlu0 %v848_v50, %s1033_s15  ;;  %v273_v51 = vmul.f32 0.5, %v848_v50 }
 0x529   :  { %v274_v52 = vadd.f32 0.5, %v273_v51 }
 0x52b   :  { %v275_v55 = vmul.f32 %v274_v52, %v239_v40  ;;  %v136_v40 = vpop.f32.mrf.mxu0 }
 0x52c   :  { %v137_v41 = vadd.f32 %v1158_v10, %v136_v40 }
 0x599   :  { %v278_v53 = vpop.permute.xlu0 %277 }
 0x59a   :  { %v280_v54 = vmul.f32 %v278_v53, %v274_v52 }
 0x59c   :  { %282 = vrot.lane.b32.xlu1 %v280_v54, %s1033_s15 }
 0x60e   :  { %v283_v56 = vpop.permute.xlu1 %282 }
 0x60f   :  { %v285_v57 = vadd.f32 %v283_v56, %v275_v55  ;;  %v583_v55 = vlaneseq }
 0x611   :  { %849 = vtanh.f32 %v285_v57  ;;  %v1250_v59 = vand.u32 127, %v583_v55 }
 0x613   :  { %vm585_vm4 = vcmp.eq.s32.totalorder %v1250_v59, 1 }
 0x617   :  { %v850_v58 = vpop.eup %849 }
 0x618   :  { %288 = vrot.lane.b32.xlu2 %v850_v58, %s1033_s15 }
 0x672   :  { %v289_v60 = vpop.permute.xlu2 %288 }
 0x673   :  { %v291_v61 = vmul.f32 %v289_v60, %v274_v52 }
 0x675   :  { %293 = vrot.lane.b32.xlu0 %v291_v61, %s1034_s5 }
 0x6e7   :  { %v1199_v62 = vpop.permute.xlu0 %293 }
 0x6e8   :  { %809 = vmatmul.msk.f32.vlgmr.msra.gmra.mxu1 %vm151_vm2, %v1199_v62 }
 0x6e9   :  { %554 = vmatpush.msra.mxu1 %v535_v34 }
 0x6eb   :  { %555 = vmatpush.msra.mxu1 %v534_v35 }
 0x6ed   :  { %556 = vmatpush.msra.mxu1 %v533_v37 }
 0x6ef   :  { %557 = vmatpush.msra.mxu1 %v532_v38 }
 0x765   :  { %v314_v1 = vpop.f32.mrf.mxu1 }
 0x766   :  { %v317_v2 = vadd.f32 %v314_v1, %v131_v0 }
 0x768   :  { %851 = vtanh.f32 %v317_v2 }
 0x76e   :  { %v852_v3 = vpop.eup %851 }
 0x76f   :  { %323 = vrot.lane.b32.xlu1 %v852_v3, %s1033_s15  ;;  %v319_v4 = vmul.f32 0.5, %v852_v3 }
 0x771   :  { %v320_v5 = vadd.f32 0.5, %v319_v4 }
 0x773   :  { %v321_v9 = vmul.f32 %v320_v5, %v285_v57 }
 0x7e1   :  { %v324_v6 = vpop.permute.xlu1 %323 }
 0x7e2   :  { %v326_v7 = vmul.f32 %v324_v6, %v320_v5 }
 0x7e4   :  { %328 = vrot.lane.b32.xlu2 %v326_v7, %s1033_s15 }
 0x83e   :  { %v329_v11 = vpop.permute.xlu2 %328 }
 0x83f   :  { %v331_v12 = vadd.f32 %v329_v11, %v321_v9 }
 0x841   :  { %853 = vtanh.f32 %v331_v12 }
 0x847   :  { %v854_v13 = vpop.eup %853 }
 0x848   :  { %334 = vrot.lane.b32.xlu0 %v854_v13, %s1033_s15 }
 0x8ba   :  { %v335_v14 = vpop.permute.xlu0 %334 }
 0x8bb   :  { %v337_v15 = vmul.f32 %v335_v14, %v320_v5  ;;  %v68_v14 = vld [vmem:[%s1359_s0 + $0x30] sm:$0xff]  ;;  %s1035_s0 = smov 96  }
 0x8bc   :  { %804 = vmatmul.msk.f32.gmra.mxu0 %vm75_vm1, %v68_v14 }
 0x8bd   :  { %339 = vrot.lane.b32.xlu1 %v337_v15, %s1034_s5 }
 0x92f   :  { %v1212_v17 = vpop.permute.xlu1 %339 }
 0x930   :  { %810 = vmatmul.msk.f32.vlgmr.msrb.gmra.mxu2 %vm151_vm2, %v1212_v17 }
 0x9b3   :  { %v360_v20 = vpop.f32.mrf.mxu2 }
 0x9b4   :  { %v363_v21 = vadd.f32 %v360_v20, %v134_v19  ;;  %v139_v19 = vpop.f32.mrf.mxu0 }
 0x9b5   :  { %v140_v20 = vadd.f32 %v1158_v10, %v139_v19 }
 0x9b6   :  { %855 = vtanh.f32 %v363_v21 }
 0x9bc   :  { %v856_v22 = vpop.eup %855 }
 0x9bd   :  { %369 = vrot.lane.b32.xlu2 %v856_v22, %s1033_s15  ;;  %v365_v23 = vmul.f32 0.5, %v856_v22 }
 0x9bf   :  { %v366_v24 = vadd.f32 0.5, %v365_v23 }
 0x9c1   :  { %v367_v27 = vmul.f32 %v366_v24, %v331_v12 }
 0xa17   :  { %v370_v25 = vpop.permute.xlu2 %369 }
 0xa18   :  { %v372_v26 = vmul.f32 %v370_v25, %v366_v24 }
 0xa1a   :  { %374 = vrot.lane.b32.xlu0 %v372_v26, %s1033_s15 }
 0xa8c   :  { %v375_v29 = vpop.permute.xlu0 %374 }
 0xa8d   :  { %v1219_v30 = vadd.f32 %v375_v29, %v367_v27 }
 0xa8f   :  { %857 = vtanh.f32 %v1219_v30 }
 0xa95   :  { %v858_v31 = vpop.eup %857 }
 0xa96   :  { %380 = vrot.lane.b32.xlu1 %v858_v31, %s1033_s15 }
 0xb08   :  { %v381_v32 = vpop.permute.xlu1 %380 }
 0xb09   :  { %v383_v33 = vmul.f32 %v381_v32, %v366_v24 }
 0xb0b   :  { %385 = vrot.lane.b32.xlu2 %v383_v33, %s1034_s5 }
 0xb65   :  { %v386_v39 = vpop.permute.xlu2 %385 }
 0xb66   :  { %811 = vmatmul.msk.f32.vlgmr.msrb.gmra.mxu3 %vm151_vm2, %v386_v39 }
 0xb6e   :  { %818 = vmatmul.msk.f32.vlgmr.msra.gmra.mxu3 %vm151_vm2, %v386_v39 }
 0xbe9   :  { %v406_v42 = vpop.f32.mrf.mxu3 }
 0xbea   :  { %v409_v43 = vadd.f32 %v406_v42, %v137_v41 }
 0xbec   :  { %859 = vtanh.f32 %v409_v43 }
 0xbf1   :  { %v571_v46 = vpop.f32.mrf.mxu3 }
 0xbf2   :  { %v860_v47 = vpop.eup %859  ;;  %v572_v48 = vadd.f32 %v1246_v44, %v571_v46 }
 0xbf3   :  { %415 = vrot.lane.b32.xlu0 %v860_v47, %s1033_s15  ;;  %v411_v4 = vmul.f32 0.5, %v860_v47 }
 0xbf4   :  { %v614_v49 = vand.u32 2147483647, %v572_v48  ;;  %v590_v63 = vmax.f32 %v572_v48, 0.0  ;;  %vm598_vm5 = vcmp.ne.f32.partialorder %v572_v48, %v572_v48 }
 0xbf5   :  { %v412_v5 = vadd.f32 0.5, %v411_v4 }
 0xbf6   :  { %v622_v50 = vsub.f32 0.0, %v614_v49 }
 0xbf7   :  { %v413_v9 = vmul.f32 %v412_v5, %v1219_v30 }
 0xbf8   :  { %v634_v51 = vmul.f32 1.442695, %v622_v50 }
 0xbfa   :  { %861 = vpow2.f32 %v634_v51 }
 0xc00   :  { %v862_v52 = vpop.eup %861 }
 0xc01   :  { %v678_v53 = vadd.f32 1.0, %v862_v52  ;;  %v681_v54 = vmul.f32 -0.5, %v862_v52  ;;  %v684_v57 = vand.u32 2147483647, %v862_v52 }
 0xc03   :  { %863 = vlog2.f32 %v678_v53  ;;  %v682_v56 = vadd.f32 1.0, %v681_v54  ;;  %vm685_vm3 = vcmp.lt.f32.partialorder %v684_v57, 0.0004427343 }
 0xc05   :  { %v683_v61 = vmul.f32 %v862_v52, %v682_v56 }
 0xc09   :  { %v864_v58 = vpop.eup %863 }
 0xc0a   :  { %v680_v60 = vmul.f32 0.6931472, %v864_v58 }
 0xc0c   :  { %v686_v0 = vsel %vm685_vm3, %v683_v61, %v680_v60 }
 0xc0d   :  { %v718_v1 = vadd.f32 %v686_v0, %v590_v63 }
 0xc0f   :  { %v726_v2 = vsel %vm598_vm5, %v572_v48, %v718_v1 }
 0xc10   :  { %v734_v3 = vsel %vm585_vm4, %v726_v2, %v572_v48 }
 0xc11   :  { %742 = vst [vmem:[#allocation10 + $0x20] sm:$0xff] %v734_v3 }
 0xc65   :  { %v416_v6 = vpop.permute.xlu0 %415 }
 0xc66   :  { %v418_v7 = vmul.f32 %v416_v6, %v412_v5 }
 0xc68   :  { %420 = vrot.lane.b32.xlu1 %v418_v7, %s1033_s15 }
 0xcda   :  { %v421_v11 = vpop.permute.xlu1 %420 }
 0xcdb   :  { %v1257_v12 = vadd.f32 %v421_v11, %v413_v9 }
 0xcdd   :  { %865 = vtanh.f32 %v1257_v12 }
 0xce3   :  { %v866_v13 = vpop.eup %865 }
 0xce4   :  { %426 = vrot.lane.b32.xlu2 %v866_v13, %s1033_s15 }
 0xd3e   :  { %v427_v15 = vpop.permute.xlu2 %426 }
 0xd3f   :  { %v429_v16 = vmul.f32 %v427_v15, %v412_v5 }
 0xd41   :  { %431 = vrot.lane.b32.xlu0 %v429_v16, %s1034_s5 }
 0xdb3   :  { %v432_v18 = vpop.permute.xlu0 %431 }
 0xdb4   :  { %812 = vmatmul.msk.f32.vlgmr.msrb.gmra.mxu1 %vm151_vm2, %v432_v18  ;;  %819 = vmatmul.msk.f32.gmra.mxu3 %vm151_vm2, %v432_v18 }
 0xdbc   :  { %814 = vmatmul.msk.f32.vlgmr.msra.gmra.mxu1 %vm151_vm2, %v1170_v28 }
 0xdc4   :  { %815 = vmatmul.msk.f32.gmra.mxu1 %vm151_vm2, %v1186_v45 }
 0xdcc   :  { %816 = vmatmul.msk.f32.gmra.mxu1 %vm151_vm2, %v1199_v62 }
 0xdd4   :  { %817 = vmatmul.msk.f32.gmra.mxu1 %vm151_vm2, %v1212_v17 }
 0xe31   :  { %v452_v21 = vpop.f32.mrf.mxu1 }
 0xe32   :  { %v455_v22 = vadd.f32 %v452_v21, %v140_v20 }
 0xe34   :  { %867 = vtanh.f32 %v455_v22 }
 0xe37   :  { %v574_v23 = vpop.f32.mrf.mxu3 }
 0xe38   :  { %v575_v24 = vadd.f32 %v1246_v44, %v574_v23 }
 0xe39   :  { %v559_v25 = vpop.f32.mrf.mxu1 }
 0xe3a   :  { %v1278_v28 = vpop.eup %867  ;;  %v615_v26 = vand.u32 2147483647, %v575_v24  ;;  %v1281_v45 = vadd.f32 %v1246_v44, %v559_v25  ;;  %v591_v54 = vmax.f32 %v575_v24, 0.0  ;;  %vm599_vm8 = vcmp.ne.f32.partialorder %v575_v24, %v575_v24 }
 0xe3b   :  { %461 = vrot.lane.b32.xlu1 %v1278_v28, %s1033_s15 }
 0xe3c   :  { %v623_v62 = vsub.f32 0.0, %v615_v26  ;;  %v610_v17 = vand.u32 2147483647, %v1281_v45  ;;  %v586_v5 = vmax.f32 %v1281_v45, 0.0  ;;  %vm594_vm9 = vcmp.ne.f32.partialorder %v1281_v45, %v1281_v45 }
 0xe3e   :  { %v636_v27 = vmul.f32 1.442695, %v623_v62  ;;  %v618_v29 = vsub.f32 0.0, %v610_v17 }
 0xe40   :  { %869 = vpow2.f32 %v636_v27  ;;  %v626_v30 = vmul.f32 1.442695, %v618_v29 }
 0xe41   :  { %v562_v31 = vpop.f32.mrf.mxu1 }
 0xe42   :  { %871 = vpow2.f32 %v626_v30  ;;  %v1287_v32 = vadd.f32 %v1246_v44, %v562_v31 }
 0xe44   :  { %v611_v33 = vand.u32 2147483647, %v1287_v32  ;;  %vm595_vm11 = vcmp.ne.f32.partialorder %v1287_v32, %v1287_v32 }
 0xe46   :  { %v870_v34 = vpop.eup %869  ;;  %v619_v35 = vsub.f32 0.0, %v611_v33 }
 0xe47   :  { %v687_v36 = vadd.f32 1.0, %v870_v34  ;;  %v690_v38 = vmul.f32 -0.5, %v870_v34  ;;  %v693_v47 = vand.u32 2147483647, %v870_v34 }
 0xe48   :  { %v872_v37 = vpop.eup %871  ;;  %v628_v39 = vmul.f32 1.442695, %v619_v35 }
 0xe49   :  { %873 = vlog2.f32 %v687_v36  ;;  %v642_v40 = vadd.f32 1.0, %v872_v37  ;;  %v565_v41 = vpop.f32.mrf.mxu1  ;;  %v645_v42 = vmul.f32 -0.5, %v872_v37  ;;  %v691_v46 = vadd.f32 1.0, %v690_v38 }
 0xe4a   :  { %875 = vpow2.f32 %v628_v39  ;;  %v1291_v43 = vadd.f32 %v1246_v44, %v565_v41  ;;  %v648_v51 = vand.u32 2147483647, %v872_v37  ;;  %vm694_vm6 = vcmp.lt.f32.partialorder %v693_v47, 0.0004427343 }
 0xe4b   :  { %877 = vlog2.f32 %v642_v40  ;;  %v646_v48 = vadd.f32 1.0, %v645_v42  ;;  %v692_v56 = vmul.f32 %v870_v34, %v691_v46 }
 0xe4c   :  { %v612_v49 = vand.u32 2147483647, %v1291_v43  ;;  %vm649_vm7 = vcmp.lt.f32.partialorder %v648_v51, 0.0004427343  ;;  %v588_v39 = vmax.f32 %v1291_v43, 0.0  ;;  %vm596_vm13 = vcmp.ne.f32.partialorder %v1291_v43, %v1291_v43 }
 0xe4d   :  { %v647_v58 = vmul.f32 %v872_v37, %v646_v48 }
 0xe4e   :  { %v620_v52 = vsub.f32 0.0, %v612_v49 }
 0xe4f   :  { %v874_v50 = vpop.eup %873 }
 0xe50   :  { %v876_v53 = vpop.eup %875  ;;  %v689_v55 = vmul.f32 0.6931472, %v874_v50  ;;  %v630_v61 = vmul.f32 1.442695, %v620_v52 }
 0xe51   :  { %v878_v57 = vpop.eup %877  ;;  %v651_v60 = vadd.f32 1.0, %v876_v53  ;;  %v568_v63 = vpop.f32.mrf.mxu1  ;;  %v654_v2 = vmul.f32 -0.5, %v876_v53  ;;  %v657_v16 = vand.u32 2147483647, %v876_v53 }
 0xe52   :  { %v695_v0 = vsel %vm694_vm6, %v692_v56, %v689_v55  ;;  %v644_v1 = vmul.f32 0.6931472, %v878_v57  ;;  %v1295_v3 = vadd.f32 %v1246_v44, %v568_v63 }
 0xe53   :  { %v719_v4 = vadd.f32 %v695_v0, %v591_v54  ;;  %879 = vlog2.f32 %v651_v60  ;;  %v655_v14 = vadd.f32 1.0, %v654_v2  ;;  %vm658_vm10 = vcmp.lt.f32.partialorder %v657_v16, 0.0004427343 }
 0xe54   :  { %v650_v6 = vsel %vm649_vm7, %v647_v58, %v644_v1  ;;  %881 = vpow2.f32 %v630_v61  ;;  %v613_v11 = vand.u32 2147483647, %v1295_v3  ;;  %v589_v51 = vmax.f32 %v1295_v3, 0.0 }
 0xe55   :  { %v727_v7 = vsel %vm599_vm8, %v575_v24, %v719_v4  ;;  %v714_v9 = vadd.f32 %v650_v6, %v586_v5  ;;  %v656_v25 = vmul.f32 %v876_v53, %v655_v14  ;;  %vm597_vm15 = vcmp.ne.f32.partialorder %v1295_v3, %v1295_v3 }
 0xe56   :  { %v735_v13 = vsel %vm585_vm4, %v727_v7, %v575_v24  ;;  %v621_v18 = vsub.f32 0.0, %v613_v11  ;;  %v587_v24 = vmax.f32 %v1287_v32, 0.0 }
 0xe57   :  { %743 = vst [vmem:[#allocation10 + $0x28] sm:$0xff] %v735_v13  ;;  %v722_v15 = vsel %vm594_vm9, %v1281_v45, %v714_v9 }
 0xe58   :  { %v730_v19 = vsel %vm585_vm4, %v722_v15, %v1281_v45  ;;  %v632_v21 = vmul.f32 1.442695, %v621_v18 }
 0xe59   :  { %v880_v20 = vpop.eup %879  ;;  %738 = vst [vmem:[#allocation10] sm:$0xff] %v730_v19 }
 0xe5a   :  { %v882_v22 = vpop.eup %881  ;;  %v653_v23 = vmul.f32 0.6931472, %v880_v20  ;;  %883 = vpow2.f32 %v632_v21 }
 0xe5b   :  { %v660_v26 = vadd.f32 1.0, %v882_v22  ;;  %v663_v17 = vmul.f32 -0.5, %v882_v22  ;;  %v666_v33 = vand.u32 2147483647, %v882_v22 }
 0xe5c   :  { %v659_v62 = vsel %vm658_vm10, %v656_v25, %v653_v23 }
 0xe5d   :  { %v715_v27 = vadd.f32 %v659_v62, %v587_v24  ;;  %885 = vlog2.f32 %v660_v26  ;;  %v664_v30 = vadd.f32 1.0, %v663_v17  ;;  %vm667_vm12 = vcmp.lt.f32.partialorder %v666_v33, 0.0004427343 }
 0xe5f   :  { %v723_v45 = vsel %vm595_vm11, %v1287_v32, %v715_v27  ;;  %v665_v38 = vmul.f32 %v882_v22, %v664_v30 }
 0xe60   :  { %v731_v29 = vsel %vm585_vm4, %v723_v45, %v1287_v32  ;;  %v884_v31 = vpop.eup %883 }
 0xe61   :  { %739 = vst [vmem:[#allocation10 + $0x8] sm:$0xff] %v731_v29  ;;  %v669_v34 = vadd.f32 1.0, %v884_v31  ;;  %v672_v36 = vmul.f32 -0.5, %v884_v31  ;;  %v675_v32 = vand.u32 2147483647, %v884_v31 }
 0xe63   :  { %v886_v35 = vpop.eup %885  ;;  %887 = vlog2.f32 %v669_v34  ;;  %v673_v42 = vadd.f32 1.0, %v672_v36  ;;  %vm676_vm14 = vcmp.lt.f32.partialorder %v675_v32, 0.0004427343 }
 0xe64   :  { %v662_v37 = vmul.f32 0.6931472, %v886_v35 }
 0xe65   :  { %v674_v50 = vmul.f32 %v884_v31, %v673_v42 }
 0xe66   :  { %v668_v40 = vsel %vm667_vm12, %v665_v38, %v662_v37 }
 0xe67   :  { %v716_v41 = vadd.f32 %v668_v40, %v588_v39 }
 0xe69   :  { %v724_v46 = vsel %vm596_vm13, %v1291_v43, %v716_v41  ;;  %v888_v47 = vpop.eup %887 }
 0xe6a   :  { %v732_v48 = vsel %vm585_vm4, %v724_v46, %v1291_v43  ;;  %v671_v49 = vmul.f32 0.6931472, %v888_v47  ;;  %v457_v43 = vmul.f32 0.5, %v1278_v28  ;;  %v143_v28 = vadd.f32 %v1158_v10, %v1153_v8 }
 0xe6b   :  { %740 = vst [vmem:[#allocation10 + $0x10] sm:$0xff] %v732_v48 }
 0xe6c   :  { %v677_v52 = vsel %vm676_vm14, %v674_v50, %v671_v49  ;;  %v458_v56 = vadd.f32 0.5, %v457_v43 }
 0xe6d   :  { %v717_v53 = vadd.f32 %v677_v52, %v589_v51 }
 0xe6e   :  { %v459_v60 = vmul.f32 %v458_v56, %v1257_v12 }
 0xe6f   :  { %v725_v54 = vsel %vm597_vm15, %v1295_v3, %v717_v53 }
 0xe70   :  { %v733_v55 = vsel %vm585_vm4, %v725_v54, %v1295_v3 }
 0xe71   :  { %741 = vst [vmem:[#allocation10 + $0x18] sm:$0xff] %v733_v55 }
 0xead   :  { %v462_v57 = vpop.permute.xlu1 %461 }
 0xeae   :  { %v464_v58 = vmul.f32 %v462_v57, %v458_v56 }
 0xeb0   :  { %466 = vrot.lane.b32.xlu2 %v464_v58, %s1033_s15 }
 0xf0a   :  { %v467_v61 = vpop.permute.xlu2 %466 }
 0xf0b   :  { %v469_v63 = vadd.f32 %v467_v61, %v459_v60 }
 0xf0d   :  { %889 = vtanh.f32 %v469_v63 }
 0xf13   :  { %v890_v0 = vpop.eup %889 }
 0xf14   :  { %472 = vrot.lane.b32.xlu0 %v890_v0, %s1033_s15 }
 0xf86   :  { %v473_v1 = vpop.permute.xlu0 %472 }
 0xf87   :  { %v475_v2 = vmul.f32 %v473_v1, %v458_v56 }
 0xf89   :  { %477 = vrot.lane.b32.xlu1 %v475_v2, %s1034_s5 }
 0xffb   :  { %v478_v3 = vpop.permute.xlu1 %477 }
 0xffc   :  { %813 = vmatmul.msk.f32.vlgmr.msra.gmra.mxu2 %vm151_vm2, %v478_v3  ;;  %820 = vmatmul.msk.f32.gmra.mxu3 %vm151_vm2, %v478_v3 }
0x107f   :  { %v498_v4 = vpop.f32.mrf.mxu2  ;;  %v577_v12 = vpop.f32.mrf.mxu3 }
0x1080   :  { %v501_v5 = vadd.f32 %v498_v4, %v143_v28  ;;  %v578_v6 = vadd.f32 %v1246_v44, %v577_v12 }
0x1082   :  { %891 = vtanh.f32 %v501_v5  ;;  %v616_v7 = vand.u32 2147483647, %v578_v6  ;;  %v592_v21 = vmax.f32 %v578_v6, 0.0  ;;  %vm600_vm1 = vcmp.ne.f32.partialorder %v578_v6, %v578_v6 }
0x1084   :  { %v624_v9 = vsub.f32 0.0, %v616_v7 }
0x1086   :  { %v638_v11 = vmul.f32 1.442695, %v624_v9 }
0x1088   :  { %v892_v13 = vpop.eup %891  ;;  %893 = vpow2.f32 %v638_v11 }
0x1089   :  { %507 = vrot.lane.b32.xlu2 %v892_v13, %s1033_s15  ;;  %v503_v26 = vmul.f32 0.5, %v892_v13 }
0x108b   :  { %v504_v62 = vadd.f32 0.5, %v503_v26 }
0x108d   :  { %v505_v45 = vmul.f32 %v504_v62, %v469_v63 }
0x108e   :  { %v894_v14 = vpop.eup %893 }
0x108f   :  { %v696_v15 = vadd.f32 1.0, %v894_v14  ;;  %v699_v16 = vmul.f32 -0.5, %v894_v14  ;;  %v702_v19 = vand.u32 2147483647, %v894_v14 }
0x1091   :  { %895 = vlog2.f32 %v696_v15  ;;  %v700_v18 = vadd.f32 1.0, %v699_v16  ;;  %vm703_vm0 = vcmp.lt.f32.partialorder %v702_v19, 0.0004427343 }
0x1093   :  { %v701_v20 = vmul.f32 %v894_v14, %v700_v18 }
0x1097   :  { %v896_v8 = vpop.eup %895 }
0x1098   :  { %v698_v10 = vmul.f32 0.6931472, %v896_v8 }
0x109a   :  { %v704_v22 = vsel %vm703_vm0, %v701_v20, %v698_v10 }
0x109b   :  { %v720_v23 = vadd.f32 %v704_v22, %v592_v21 }
0x109d   :  { %v728_v25 = vsel %vm600_vm1, %v578_v6, %v720_v23 }
0x109e   :  { %v736_v24 = vsel %vm585_vm4, %v728_v25, %v578_v6 }
0x109f   :  { %744 = vst [vmem:[#allocation10 + $0x30] sm:$0xff] %v736_v24 }
0x10e3   :  { %v508_v17 = vpop.permute.xlu2 %507 }
0x10e4   :  { %v510_v27 = vmul.f32 %v508_v17, %v504_v62 }
0x10e6   :  { %512 = vrot.lane.b32.xlu0 %v510_v27, %s1033_s15 }
0x1158   :  { %v513_v29 = vpop.permute.xlu0 %512 }
0x1159   :  { %v515_v30 = vadd.f32 %v513_v29, %v505_v45 }
0x115b   :  { %897 = vtanh.f32 %v515_v30  ;;  %528 = vrot.lane.b32.xlu0 %v515_v30, %s1035_s0 }
0x1161   :  { %v898_v31 = vpop.eup %897 }
0x1162   :  { %518 = vrot.lane.b32.xlu1 %v898_v31, %s1033_s15 }
0x11cd   :  { %v529_v33 = vpop.permute.xlu0 %528 }
0x11ce   :  { %531 = vst.msk [vmem:[#allocation8] sm:$0xff] %vm151_vm2, %v529_v33 }
0x11cf   :  { %767 = dma.vmem_to_hbm [thread:$0]  %s763_s1, 128, %s765_s17, [#allocation9]  }
0x11d4   :  { %v519_v34 = vpop.permute.xlu1 %518 }
0x11d5   :  { %v521_v35 = vmul.f32 %v519_v34, %v504_v62 }
0x11d7   :  { %523 = vrot.lane.b32.xlu2 %v521_v35, %s1034_s5  ;;  %s751_s5 = sshll.u32 %s1037_s20, 4  ;;  %s752_s5 = int_to_ptr.vmem [resolvable:$true] %s751_s5 }
0x1231   :  { %v524_v36 = vpop.permute.xlu2 %523 }
0x1232   :  { %526 = vst.msk [vmem:[#allocation7] sm:$0xff] %vm151_vm2, %v524_v36  ;;  %821 = vmatmul.msk.f32.gmra.mxu3 %vm151_vm2, %v524_v36 }
0x1233   :  { %756 = dma.vmem_to_hbm [thread:$0]  %s752_s5, 128, %s754_s19, [#allocation4]  }
0x12b5   :  { %v580_v37 = vpop.f32.mrf.mxu3 }
0x12b6   :  { %v581_v38 = vadd.f32 %v1246_v44, %v580_v37 }
0x12b8   :  { %v617_v39 = vand.u32 2147483647, %v581_v38  ;;  %v593_v52 = vmax.f32 %v581_v38, 0.0  ;;  %vm601_vm3 = vcmp.ne.f32.partialorder %v581_v38, %v581_v38 }
0x12ba   :  { %v625_v40 = vsub.f32 0.0, %v617_v39 }
0x12bc   :  { %v640_v41 = vmul.f32 1.442695, %v625_v40 }
0x12be   :  { %899 = vpow2.f32 %v640_v41 }
0x12c4   :  { %v900_v42 = vpop.eup %899 }
0x12c5   :  { %v705_v32 = vadd.f32 1.0, %v900_v42  ;;  %v708_v46 = vmul.f32 -0.5, %v900_v42  ;;  %v711_v48 = vand.u32 2147483647, %v900_v42 }
0x12c7   :  { %901 = vlog2.f32 %v705_v32  ;;  %v709_v47 = vadd.f32 1.0, %v708_v46  ;;  %vm712_vm2 = vcmp.lt.f32.partialorder %v711_v48, 0.0004427343 }
0x12c9   :  { %v710_v51 = vmul.f32 %v900_v42, %v709_v47 }
0x12cd   :  { %v902_v49 = vpop.eup %901 }
0x12ce   :  { %v707_v50 = vmul.f32 0.6931472, %v902_v49 }
0x12d0   :  { %v713_v44 = vsel %vm712_vm2, %v710_v51, %v707_v50 }
0x12d1   :  { %v721_v53 = vadd.f32 %v713_v44, %v593_v52 }
0x12d3   :  { %v729_v54 = vsel %vm601_vm3, %v581_v38, %v721_v53 }
0x12d4   :  { %v737_v55 = vsel %vm585_vm4, %v729_v54, %v581_v38 }
0x12d5   :  { %745 = vst [vmem:[#allocation10 + $0x38] sm:$0xff] %v737_v55 }
0x12d6   :  { %780 = dma.vmem_to_hbm [thread:$0]  %s773_s9, 1024, %s775_s2, [#allocation9], %s1039_s23, %s1039_s23, %s1040_s24  }
0x12d7   :  { %1027 = dma.done.wait [#allocation4], 128  }
0x12d8   :  { %1028 = vsyncadd [#allocation4], 4294967168 }
0x12d9   :  { %1029 = dma.done.wait [#allocation9], 1152  }
0x12da   :  { %1030 = vsyncadd [#allocation9], 4294966144 }
0x12db   :  { %793 = vsyncpa [#allocation3], 1 }
0x12dc   :  { %794 = vsyncpa [#allocation6], 1 }
0x12dd   :  { %795 = vsyncpa [#allocation4], 1 }
0x12de   :  { %796 = vsyncpa [#allocation9], 1 }

</bundles_post_ra>
